<compile_context>
chip_gen: v7x
topology: tpu7x:2x2x1
jax: 0.10.0
libtpu: 0.0.40
codegen_flags: <defaults>
</compile_context>

<pallas_src>
import jax
import jax.numpy as jnp
from jax.experimental import pallas as pl
from jax.experimental.pallas import tpu as pltpu

INPUT_SHAPE = 4
HIDDEN = 256
N_ACTIONS = 2


def _round_up(n, m):
    return ((n + m - 1) // m) * m


def mlp_softmax2_kernel(x_ref, w1_ref, b1_ref, w2d_ref, b2d_ref, o_ref):
    # x_ref:   (IN, TB)        input tile, transposed (batch on lanes)
    # w1_ref:  (HIDDEN, IN)    first-layer weight  (resident)
    # b1_ref:  (HIDDEN, 1)     first-layer bias    (resident, f32)
    # w2d_ref: (1, HIDDEN)     w2[:,0] - w2[:,1]   (resident)
    # b2d_ref: (1, 1)          b2[0]  - b2[1]      (resident, f32)
    # o_ref:   (N_ACTIONS, TB) probabilities, lane-dense output tile

    # Linear 1 + ReLU: (HIDDEN, IN) @ (IN, TB) -> (HIDDEN, TB), f32 accumulation.
    h = jnp.dot(w1_ref[...], x_ref[...], preferred_element_type=jnp.float32)
    h = jnp.maximum(h + b1_ref[...], 0.0)

    # 2-class softmax in closed form: d = logit0 - logit1 (a (1,256)@(256,TB)
    # weighted reduction), then p0 = sigmoid(d), p1 = 1 - p0 (sums to 1 exactly).
    d = jnp.dot(w2d_ref[...], h.astype(w2d_ref.dtype),
                preferred_element_type=jnp.float32) + b2d_ref[...]     # (1, TB)
    p0 = jax.nn.sigmoid(d)                                             # (1, TB) f32

    # Build the (N_ACTIONS, TB) tile: row 0 = p0, row 1 = 1 - p0.
    row = jax.lax.broadcasted_iota(jnp.int32, o_ref.shape, 0)
    o_ref[...] = jnp.where(row == 0, p0, 1.0 - p0).astype(o_ref.dtype)


def _choose_tb(B):
    b128 = _round_up(max(B, 1), 128)           # lane-dense: tile is the last dim
    tb = min(2048, b128)
    # Ensure >= 2 grid steps for large batches so the "parallel" batch axis can
    # shard across both TensorCores on v7x (harmless on v5e/v6e).
    if b128 >= 2 * 128 and b128 // tb < 2:
        tb = _round_up(pl.cdiv(b128, 2), 128)
    return tb


def network_forward(x, w1, b1, w2, b2, *, tb=None, use_bf16_matmul=False):
    """x: (B, 4) f32. Weights in math layout: w1 (4,256), b1 (1,256), w2 (256,2), b2 (1,2)."""
    B = x.shape[0]
    if tb is None:
        tb = _choose_tb(B)
    b_pad = _round_up(B, tb)
    if b_pad != B:
        x = jnp.pad(x, ((0, b_pad - B), (0, 0)))

    # Layout plumbing (done once in XLA): transpose to (features, batch) so the
    # kernel output is a lane-dense (2, TB) tile instead of a padded (TB, 128).
    x_t = x.T                                                     # (IN, b_pad)
    w1_t = w1.T                                                   # (HIDDEN, IN)
    b1_t = b1.reshape(HIDDEN, 1).astype(jnp.float32)              # (HIDDEN, 1)
    w2d = (w2[:, 0] - w2[:, 1]).reshape(1, HIDDEN)                # (1, HIDDEN)
    b2d = (b2[:, 0] - b2[:, 1]).reshape(1, 1).astype(jnp.float32) # (1, 1)

    # Optional bf16 matmul operands (f32 accumulation + f32 bias/ReLU/sigmoid).
    mm_dtype = jnp.bfloat16 if use_bf16_matmul else jnp.float32
    x_t = x_t.astype(mm_dtype)
    w1_t = w1_t.astype(mm_dtype)
    w2d = w2d.astype(mm_dtype)

    grid = (pl.cdiv(b_pad, tb),)

    out_t = pl.pallas_call(
        mlp_softmax2_kernel,
        out_shape=jax.ShapeDtypeStruct((N_ACTIONS, b_pad), jnp.float32),
        grid=grid,
        in_specs=[
            pl.BlockSpec((INPUT_SHAPE, tb), lambda i: (0, i)),       # x: per-tile
            pl.BlockSpec((HIDDEN, INPUT_SHAPE), lambda i: (0, 0)),   # w1: resident
            pl.BlockSpec((HIDDEN, 1), lambda i: (0, 0)),             # b1: resident
            pl.BlockSpec((1, HIDDEN), lambda i: (0, 0)),             # w2 diff: resident
            pl.BlockSpec((1, 1), lambda i: (0, 0)),                  # b2 diff: resident
        ],
        out_specs=pl.BlockSpec((N_ACTIONS, tb), lambda i: (0, i)),   # lane-dense (2, TB)
        compiler_params=pltpu.CompilerParams(
            dimension_semantics=("parallel",)),
    )(x_t, w1_t, b1_t, w2d, b2d)

    # Padded batch rows hold garbage probabilities; slice them off here.
    return out_t[:, :B].T                                            # (B, N_ACTIONS)


def init_params(key):
    # Deterministic synthetic init (mimics PyTorch's default uniform bounds).
    k1, k2, k3, k4 = jax.random.split(key, 4)
    bound1 = 1.0 / jnp.sqrt(INPUT_SHAPE)
    bound2 = 1.0 / jnp.sqrt(HIDDEN)
    w1 = jax.random.uniform(k1, (INPUT_SHAPE, HIDDEN), jnp.float32, -bound1, bound1)
    b1 = jax.random.uniform(k2, (1, HIDDEN), jnp.float32, -bound1, bound1)
    w2 = jax.random.uniform(k3, (HIDDEN, N_ACTIONS), jnp.float32, -bound2, bound2)
    b2 = jax.random.uniform(k4, (1, N_ACTIONS), jnp.float32, -bound2, bound2)
    return w1, b1, w2, b2


def reference_forward(x, w1, b1, w2, b2):
    h = jnp.maximum(x @ w1 + b1, 0.0)
    logits = h @ w2 + b2
    return jax.nn.softmax(logits, axis=1)


if __name__ == "__main__":
    key = jax.random.PRNGKey(0)
    kx, kp = jax.random.split(key)
    w1, b1, w2, b2 = init_params(kp)

    ATOL = 1e-4       # f32 path: only reassociation-level differences vs reference
    SUM_ATOL = 1e-6   # p0 + (1 - p0) sums to 1 up to one f32 ulp

    # Small batch -> single grid step (tb = 128).
    batch = 8
    x = jax.random.normal(kx, (batch, INPUT_SHAPE), dtype=jnp.float32)
    out = jax.block_until_ready(network_forward(x, w1, b1, w2, b2))
    ref = reference_forward(x, w1, b1, w2, b2)
    assert out.shape == (batch, N_ACTIONS)
    assert jnp.allclose(out, ref, atol=ATOL, rtol=ATOL)
    assert jnp.allclose(jnp.sum(out, axis=1), jnp.ones((batch,)), atol=SUM_ATOL)

    # Ragged batch exercising the padding path.
    batch2 = 13
    x2 = jax.random.normal(jax.random.PRNGKey(1), (batch2, INPUT_SHAPE), dtype=jnp.float32)
    out2 = jax.block_until_ready(network_forward(x2, w1, b1, w2, b2))
    ref2 = reference_forward(x2, w1, b1, w2, b2)
    assert out2.shape == (batch2, N_ACTIONS)
    assert jnp.allclose(out2, ref2, atol=ATOL, rtol=ATOL)
    assert jnp.allclose(jnp.sum(out2, axis=1), jnp.ones((batch2,)), atol=SUM_ATOL)

    # Larger batch -> multi-step grid (2 steps, padded rows sliced off).
    batch3 = 300
    x3 = jax.random.normal(jax.random.PRNGKey(2), (batch3, INPUT_SHAPE), dtype=jnp.float32)
    out3 = jax.block_until_ready(network_forward(x3, w1, b1, w2, b2))
    ref3 = reference_forward(x3, w1, b1, w2, b2)
    assert out3.shape == (batch3, N_ACTIONS)
    assert jnp.allclose(out3, ref3, atol=ATOL, rtol=ATOL)
    assert jnp.allclose(jnp.sum(out3, axis=1), jnp.ones((batch3,)), atol=SUM_ATOL)

    # bf16 matmul-operand path (v5e/v6e/v7x MXUs are bf16-native); f32 accumulate.
    out3_bf16 = jax.block_until_ready(
        network_forward(x3, w1, b1, w2, b2, use_bf16_matmul=True))
    assert out3_bf16.shape == (batch3, N_ACTIONS)
    assert jnp.allclose(out3_bf16, ref3, atol=2e-2)          # bf16 input rounding only
    assert jnp.allclose(jnp.sum(out3_bf16, axis=1), jnp.ones((batch3,)), atol=SUM_ATOL)

    print("KERNEL_OK")
</pallas_src>

<mosaic_0001>
module attributes {stable_mosaic.version = 11 : i64} {
  func.func @mlp_softmax2_kernel(%arg0: i32, %arg1: memref<4x128xf32, #tpu.memory_space<vmem>>, %arg2: memref<256x4xf32, #tpu.memory_space<vmem>>, %arg3: memref<256x1xf32, #tpu.memory_space<vmem>>, %arg4: memref<1x256xf32, #tpu.memory_space<vmem>>, %arg5: memref<1x1xf32, #tpu.memory_space<vmem>>, %arg6: memref<2x128xf32, #tpu.memory_space<vmem>>) attributes {dimension_semantics = [#tpu.dimension_semantics<parallel>], iteration_bounds = array<i64: 1>, scalar_prefetch = 0 : i64, scratch_operands = 0 : i64, tpu.core_type = #tpu.core_type<tc>, window_params = [{transform_indices = @transform_0, window_bounds = array<i64: 4, 128>}, {pipeline_mode = #tpu.pipeline_mode<synchronous>, transform_indices = @transform_1, window_bounds = array<i64: 256, 4>}, {pipeline_mode = #tpu.pipeline_mode<synchronous>, transform_indices = @transform_2, window_bounds = array<i64: 256, 1>}, {pipeline_mode = #tpu.pipeline_mode<synchronous>, transform_indices = @transform_3, window_bounds = array<i64: 1, 256>}, {pipeline_mode = #tpu.pipeline_mode<synchronous>, transform_indices = @transform_4, window_bounds = array<i64: 1, 1>}, {transform_indices = @transform_5, window_bounds = array<i64: 2, 128>}]} {
    %c0 = arith.constant 0 : index
    %c0_0 = arith.constant 0 : index
    %0 = vector.load %arg2[%c0, %c0_0] : memref<256x4xf32, #tpu.memory_space<vmem>>, vector<256x4xf32>
    %c0_1 = arith.constant 0 : index
    %c0_2 = arith.constant 0 : index
    %1 = vector.load %arg1[%c0_1, %c0_2] : memref<4x128xf32, #tpu.memory_space<vmem>>, vector<4x128xf32>
    %cst = arith.constant dense<0.000000e+00> : vector<256x128xf32>
    %2 = tpu.matmul %0, %1, %cst {dimension_numbers = #tpu.dot_dimension_numbers<[1], [0], [0], [1], [0, 0, 1, 1], [], []>} : vector<256x4xf32>, vector<4x128xf32>, vector<256x128xf32> -> vector<256x128xf32>
    %c0_3 = arith.constant 0 : index
    %c0_4 = arith.constant 0 : index
    %3 = vector.load %arg3[%c0_3, %c0_4] : memref<256x1xf32, #tpu.memory_space<vmem>>, vector<256x1xf32>
    %4 = vector.broadcast %3 : vector<256x1xf32> to vector<256x128xf32>
    %5 = arith.addf %2, %4 : vector<256x128xf32>
    %cst_5 = arith.constant 0.000000e+00 : f32
    %6 = vector.broadcast %cst_5 : f32 to vector<256x128xf32>
    %7 = arith.maximumf %5, %6 : vector<256x128xf32>
    %c0_6 = arith.constant 0 : index
    %c0_7 = arith.constant 0 : index
    %8 = vector.load %arg4[%c0_6, %c0_7] : memref<1x256xf32, #tpu.memory_space<vmem>>, vector<1x256xf32>
    %cst_8 = arith.constant dense<0.000000e+00> : vector<1x128xf32>
    %9 = tpu.matmul %8, %7, %cst_8 {dimension_numbers = #tpu.dot_dimension_numbers<[1], [0], [0], [1], [0, 0, 1, 1], [], []>} : vector<1x256xf32>, vector<256x128xf32>, vector<1x128xf32> -> vector<1x128xf32>
    %c0_9 = arith.constant 0 : index
    %c0_10 = arith.constant 0 : index
    %10 = vector.load %arg5[%c0_9, %c0_10] : memref<1x1xf32, #tpu.memory_space<vmem>>, vector<1x1xf32>
    %11 = vector.broadcast %10 : vector<1x1xf32> to vector<1x128xf32>
    %12 = arith.addf %9, %11 : vector<1x128xf32>
    %13 = arith.negf %12 : vector<1x128xf32>
    %14 = math.exp %13 : vector<1x128xf32>
    %cst_11 = arith.constant 1.000000e+00 : f32
    %15 = vector.broadcast %cst_11 : f32 to vector<1x128xf32>
    %16 = arith.addf %15, %14 : vector<1x128xf32>
    %17 = arith.divf %15, %16 : vector<1x128xf32>
    %18 = tpu.iota {dimensions = array<i32: 0>} : vector<2x128xi32>
    %c0_i32 = arith.constant 0 : i32
    %19 = vector.broadcast %c0_i32 : i32 to vector<2x128xi32>
    %20 = arith.cmpi eq, %18, %19 : vector<2x128xi32>
    %cst_12 = arith.constant 1.000000e+00 : f32
    %21 = vector.broadcast %cst_12 : f32 to vector<1x128xf32>
    %22 = arith.subf %21, %17 : vector<1x128xf32>
    %23 = vector.shape_cast %17 : vector<1x128xf32> to vector<1x128xf32>
    %24 = vector.broadcast %23 : vector<1x128xf32> to vector<2x128xf32>
    %25 = vector.shape_cast %22 : vector<1x128xf32> to vector<1x128xf32>
    %26 = vector.broadcast %25 : vector<1x128xf32> to vector<2x128xf32>
    %27 = arith.select %20, %24, %26 : vector<2x128xi1>, vector<2x128xf32>
    %c0_13 = arith.constant 0 : index
    %c0_14 = arith.constant 0 : index
    %28 = vector.load %arg6[%c0_13, %c0_14] : memref<2x128xf32, #tpu.memory_space<vmem>>, vector<2x128xf32>
    tpu.vector_store %arg6[%c0_13, %c0_14], %27 {strides = array<i32>} : memref<2x128xf32, #tpu.memory_space<vmem>>, vector<2x128xf32>,
    return
  }
  func.func @transform_0(%arg0: i32) -> (i32, i32) {
    %c0_i32 = arith.constant 0 : i32
    %c0_i32_0 = arith.constant 0 : i32
    return %c0_i32, %arg0 : i32, i32
  }
  func.func @transform_1(%arg0: i32) -> (i32, i32) {
    %c0_i32 = arith.constant 0 : i32
    %c0_i32_0 = arith.constant 0 : i32
    %c0_i32_1 = arith.constant 0 : i32
    return %c0_i32, %c0_i32_0 : i32, i32
  }
  func.func @transform_2(%arg0: i32) -> (i32, i32) {
    %c0_i32 = arith.constant 0 : i32
    %c0_i32_0 = arith.constant 0 : i32
    %c0_i32_1 = arith.constant 0 : i32
    return %c0_i32, %c0_i32_0 : i32, i32
  }
  func.func @transform_3(%arg0: i32) -> (i32, i32) {
    %c0_i32 = arith.constant 0 : i32
    %c0_i32_0 = arith.constant 0 : i32
    %c0_i32_1 = arith.constant 0 : i32
    return %c0_i32, %c0_i32_0 : i32, i32
  }
  func.func @transform_4(%arg0: i32) -> (i32, i32) {
    %c0_i32 = arith.constant 0 : i32
    %c0_i32_0 = arith.constant 0 : i32
    %c0_i32_1 = arith.constant 0 : i32
    return %c0_i32, %c0_i32_0 : i32, i32
  }
  func.func @transform_5(%arg0: i32) -> (i32, i32) {
    %c0_i32 = arith.constant 0 : i32
    %c0_i32_0 = arith.constant 0 : i32
    return %c0_i32, %arg0 : i32, i32
  }
}

</mosaic_0001>

<bundles_post_ra>
// kernel: tpu_custom_call.1
= control target key start
LH: loop header
LB: loop body
LE: loop exit
PB: predicated region body
PF: predicated region fallthrough
CT: control target
= control target key end

     0   :  { %s1306_s0 = inlined_call_operand.vmem [shape: f32[4,128], index: 0, kind: input, shape index: {}]   ;;  %s1307_s1 = inlined_call_operand.vmem [shape: f32[256,4], index: 1, kind: input, shape index: {}]   ;;  %s1308_s2 = inlined_call_operand.vmem [shape: f32[256,1], index: 2, kind: input, shape index: {}]   ;;  %s1309_s3 = inlined_call_operand.vmem [shape: f32[1,256], index: 3, kind: input, shape index: {}]   ;;  %s1310_s4 = inlined_call_operand.<no memory space> [shape: f32[1,1], index: 4, kind: input, shape index: {}]   ;;  %s1311_s5 = inlined_call_operand.hbm [shape: f32[2,128], index: 5, kind: output, shape index: {}]  }
   0x1   :  { %v10_v0 = vstv %s1310_s4 }
   0x2   :  { %11 = vst [vmem:[#allocation2] sm:$0x1] %v10_v0 }
   0x3   :  { %v55_v1 = vld [vmem:[%s1306_s0] sm:$0xf]  ;;  %vm345_vm0 = vcmask 1043456   ;;  %vm248_vm1 = vcmask 31744   ;;  %v24_v3 = vld [vmem:[%s1307_s1 + $0x8] sm:$0xff]  ;;  %v25_v4 = vld [vmem:[%s1307_s1 + $0x10] sm:$0xff] }
   0x4   :  { %v23_v2 = vld [vmem:[%s1307_s1] sm:$0xff]  ;;  %834 = vmatprep.subr.msk.mxu0 %vm345_vm0, %v55_v1  ;;  %v948_v5 = vmov 0   ;;  %v26_v6 = vld [vmem:[%s1307_s1 + $0x18] sm:$0xff]  ;;  %v73_v10 = vld [vmem:[%s1308_s2 + $0x88] sm:$0xff] }
   0x5   :  { %836 = vmatprep.mubr.msk.f32.mxu0 %vm248_vm1, %v23_v2  ;;  %835 = vmatpush3.msk.msra.mxu0 %vm345_vm0, %v55_v1  ;;  %v72_v7 = vld [vmem:[%s1308_s2 + $0x80] sm:$0xff]  ;;  %v57_v11 = vld [vmem:[%s1308_s2 + $0x8] sm:$0xff]  ;;  %v29_v13 = vld [vmem:[%s1307_s1 + $0x30] sm:$0xff] }
   0x6   :  { %918 = vset.pattern.permute.xlu0 %v948_v5  ;;  %837 = vmatmul.mubr.msk.f32.vlgmr.msra.gmra.mrb[0].mxu0 %vm248_vm1, %v24_v3  ;;  %v27_v8 = vld [vmem:[%s1307_s1 + $0x20] sm:$0xff]  ;;  %v28_v12 = vld [vmem:[%s1307_s1 + $0x28] sm:$0xff]  ;;  %v74_v14 = vld [vmem:[%s1308_s2 + $0x90] sm:$0xff] }
   0x7   :  { %919 = vset.pattern.permute.xlu1 %v948_v5  ;;  %839 = vmatprep.mubr.msk.f32.mxu0 %vm248_vm1, %v25_v4  ;;  %v56_v9 = vld [vmem:[%s1308_s2] sm:$0xff]  ;;  %v75_v15 = vld [vmem:[%s1308_s2 + $0x98] sm:$0xff]  ;;  %v58_v18 = vld [vmem:[%s1308_s2 + $0x10] sm:$0xff] }
   0x8   :  { %170 = vperm.xlu0 %918, %v72_v7   ;;  %90 = vperm.xlu1 %919, %v56_v9   ;;  %v30_v16 = vld [vmem:[%s1307_s1 + $0x38] sm:$0xff]  ;;  %v31_v17 = vld [vmem:[%s1307_s1 + $0x40] sm:$0xff]  ;;  %v32_v20 = vld [vmem:[%s1307_s1 + $0x48] sm:$0xff] }
   0x9   :  { %v59_v19 = vld [vmem:[%s1308_s2 + $0x18] sm:$0xff]  ;;  %v33_v21 = vld [vmem:[%s1307_s1 + $0x50] sm:$0xff]  ;;  %v76_v22 = vld [vmem:[%s1308_s2 + $0xa0] sm:$0xff] }
   0xa   :  { %840 = vmatmul.mubr.msk.f32.gmra.mrb[2].mxu0 %vm248_vm1, %v26_v6  ;;  %v77_v23 = vld [vmem:[%s1308_s2 + $0xa8] sm:$0xff]  ;;  %v34_v24 = vld [vmem:[%s1307_s1 + $0x58] sm:$0xff]  ;;  %v35_v25 = vld [vmem:[%s1307_s1 + $0x60] sm:$0xff] }
   0xb   :  { %842 = vmatprep.mubr.msk.f32.mxu0 %vm248_vm1, %v27_v8  ;;  %v60_v26 = vld [vmem:[%s1308_s2 + $0x20] sm:$0xff] }
   0xc   :  { %175 = vperm.xlu0 %918, %v73_v10   ;;  %95 = vperm.xlu1 %919, %v57_v11  }
   0xe   :  { %843 = vmatmul.mubr.msk.f32.gmra.mrb[4].mxu0 %vm248_vm1, %v28_v12 }
   0xf   :  { %845 = vmatprep.mubr.msk.f32.mxu0 %vm248_vm1, %v29_v13 }
  0x10   :  { %180 = vperm.xlu0 %918, %v74_v14   ;;  %185 = vperm.xlu1 %919, %v75_v15  }
  0x12   :  { %846 = vmatmul.mubr.msk.f32.gmra.mrb[6].mxu0 %vm248_vm1, %v30_v16 }
  0x13   :  { %848 = vmatprep.mubr.msk.f32.mxu0 %vm248_vm1, %v31_v17 }
  0x14   :  { %100 = vperm.xlu0 %918, %v58_v18   ;;  %105 = vperm.xlu1 %919, %v59_v19  }
  0x16   :  { %849 = vmatmul.mubr.msk.f32.gmra.mrb[8].mxu0 %vm248_vm1, %v32_v20 }
  0x17   :  { %851 = vmatprep.mubr.msk.f32.mxu0 %vm248_vm1, %v33_v21 }
  0x18   :  { %190 = vperm.xlu0 %918, %v76_v22   ;;  %195 = vperm.xlu1 %919, %v77_v23  }
  0x19   :  { %12 = vsyncpa [#allocation4], 0  ;;  %v61_v27 = vld [vmem:[%s1308_s2 + $0x28] sm:$0xff]  ;;  %v37_v29 = vld [vmem:[%s1307_s1 + $0x70] sm:$0xff]  ;;  %v613_v4 = vlaneseq }
  0x1a   :  { %852 = vmatmul.mubr.msk.f32.gmra.mrb[10].mxu0 %vm248_vm1, %v34_v24  ;;  %v36_v28 = vld [vmem:[%s1307_s1 + $0x68] sm:$0xff]  ;;  %v78_v30 = vld [vmem:[%s1308_s2 + $0xb0] sm:$0xff]  ;;  %v79_v31 = vld [vmem:[%s1308_s2 + $0xb8] sm:$0xff] }
  0x1b   :  { %854 = vmatprep.mubr.msk.f32.mxu0 %vm248_vm1, %v35_v25  ;;  %v38_v32 = vld [vmem:[%s1307_s1 + $0x78] sm:$0xff]  ;;  %v39_v33 = vld [vmem:[%s1307_s1 + $0x80] sm:$0xff]  ;;  %v62_v34 = vld [vmem:[%s1308_s2 + $0x30] sm:$0xff]  ;;  %v1210_v5 = vshrl.u32 %v613_v4, 7 }
  0x1c   :  { %110 = vperm.xlu0 %918, %v60_v26   ;;  %115 = vperm.xlu1 %919, %v61_v27   ;;  %v63_v35 = vld [vmem:[%s1308_s2 + $0x38] sm:$0xff]  ;;  %v40_v36 = vld [vmem:[%s1307_s1 + $0x88] sm:$0xff]  ;;  %v41_v37 = vld [vmem:[%s1307_s1 + $0x90] sm:$0xff] }
  0x1d   :  { %v80_v38 = vld [vmem:[%s1308_s2 + $0xc0] sm:$0xff]  ;;  %v81_v39 = vld [vmem:[%s1308_s2 + $0xc8] sm:$0xff]  ;;  %v42_v40 = vld [vmem:[%s1307_s1 + $0x98] sm:$0xff]  ;;  %v624_v8 = vsub.s32 1, %v1210_v5  ;;  %vm706_vm2 = vcmp.eq.s32.totalorder %v1210_v5, 0 }
  0x1e   :  { %855 = vmatmul.mubr.msk.f32.gmra.mrb[12].mxu0 %vm248_vm1, %v36_v28  ;;  %v43_v41 = vld [vmem:[%s1307_s1 + $0xa0] sm:$0xff]  ;;  %v65_v43 = vld [vmem:[%s1308_s2 + $0x48] sm:$0xff]  ;;  %v45_v45 = vld [vmem:[%s1307_s1 + $0xb0] sm:$0xff] }
  0x1f   :  { %857 = vmatprep.mubr.msk.f32.mxu0 %vm248_vm1, %v37_v29  ;;  %v64_v42 = vld [vmem:[%s1308_s2 + $0x40] sm:$0xff]  ;;  %v44_v44 = vld [vmem:[%s1307_s1 + $0xa8] sm:$0xff]  ;;  %v82_v46 = vld [vmem:[%s1308_s2 + $0xd0] sm:$0xff] }
  0x20   :  { %200 = vperm.xlu0 %918, %v78_v30   ;;  %205 = vperm.xlu1 %919, %v79_v31   ;;  %v83_v47 = vld [vmem:[%s1308_s2 + $0xd8] sm:$0xff]  ;;  %v47_v49 = vld [vmem:[%s1307_s1 + $0xc0] sm:$0xff]  ;;  %v66_v50 = vld [vmem:[%s1308_s2 + $0x50] sm:$0xff] }
  0x21   :  { %v46_v48 = vld [vmem:[%s1307_s1 + $0xb8] sm:$0xff]  ;;  %v48_v52 = vld [vmem:[%s1307_s1 + $0xc8] sm:$0xff]  ;;  %v49_v53 = vld [vmem:[%s1307_s1 + $0xd0] sm:$0xff] }
  0x22   :  { %858 = vmatmul.mubr.msk.f32.gmra.mrb[14].mxu0 %vm248_vm1, %v38_v32  ;;  %v67_v51 = vld [vmem:[%s1308_s2 + $0x58] sm:$0xff]  ;;  %v84_v54 = vld [vmem:[%s1308_s2 + $0xe0] sm:$0xff]  ;;  %v85_v55 = vld [vmem:[%s1308_s2 + $0xe8] sm:$0xff] }
  0x23   :  { %860 = vmatprep.mubr.msk.f32.mxu0 %vm248_vm1, %v39_v33  ;;  %v50_v56 = vld [vmem:[%s1307_s1 + $0xd8] sm:$0xff]  ;;  %v51_v57 = vld [vmem:[%s1307_s1 + $0xe0] sm:$0xff]  ;;  %v69_v59 = vld [vmem:[%s1308_s2 + $0x68] sm:$0xff] }
  0x24   :  { %120 = vperm.xlu0 %918, %v62_v34   ;;  %125 = vperm.xlu1 %919, %v63_v35   ;;  %v68_v58 = vld [vmem:[%s1308_s2 + $0x60] sm:$0xff]  ;;  %v52_v60 = vld [vmem:[%s1307_s1 + $0xe8] sm:$0xff]  ;;  %v53_v61 = vld [vmem:[%s1307_s1 + $0xf0] sm:$0xff] }
  0x25   :  { %v86_v62 = vld [vmem:[%s1308_s2 + $0xf0] sm:$0xff]  ;;  %v87_v63 = vld [vmem:[%s1308_s2 + $0xf8] sm:$0xff]  ;;  %v607_v3 = vld [vmem:[#allocation2] sm:$0x1] }
  0x26   :  { %861 = vmatmul.mubr.msk.f32.gmra.mrb[16].mxu0 %vm248_vm1, %v40_v36  ;;  %v54_v0 = vld [vmem:[%s1307_s1 + $0xf8] sm:$0xff]  ;;  %v70_v1 = vld [vmem:[%s1308_s2 + $0x70] sm:$0xff]  ;;  %v1218_v9 = vld [vmem:[%s1309_s3] sm:$0x3] }
  0x27   :  { %863 = vmatprep.mubr.msk.f32.mxu0 %vm248_vm1, %v41_v37  ;;  %v71_v2 = vld [vmem:[%s1308_s2 + $0x78] sm:$0xff]  ;;  %v625_v10 = vrot.slane %v1218_v9, %v624_v8  ;;  %s949_s2 = smov [#allocation3]  }
  0x28   :  { %210 = vperm.xlu0 %918, %v80_v38   ;;  %215 = vperm.xlu1 %919, %v81_v39   ;;  %s724_s3 = sshll.u32 %s949_s2, 4  ;;  %s725_s3 = int_to_ptr.vmem [resolvable:$true] %s724_s3 }
  0x29   :  { %692 = vmatprep.mubr.f32.mxu1 %v625_v10  ;;  %s924_s16 = scalar_lea.vmem %s725_s3, 32  ;;  %p929_p1 = scmp.lt.s32.totalorder %s725_s3, %s725_s3 }
  0x2a   :  { %864 = vmatmul.mubr.msk.f32.gmra.mrb[18].mxu0 %vm248_vm1, %v42_v40  ;;  %p925_p0 = scmp.ne.s32.totalorder %s725_s3, %s924_s16  ;;  %p930_p2 = scmp.lt.s32.totalorder %s924_s16, %s924_s16 }
  0x2b   :  { %866 = vmatprep.mubr.msk.f32.mxu0 %vm248_vm1, %v43_v41 }
  0x2c   :  { %130 = vperm.xlu0 %918, %v64_v42   ;;  %135 = vperm.xlu1 %919, %v65_v43   ;;  %p931_p3 = por %p930_p2, %p929_p1 }
  0x2e   :  { %867 = vmatmul.mubr.msk.f32.gmra.mrb[20].mxu0 %vm248_vm1, %v44_v44  ;;  %p932_p4 = pnand %p931_p3, %p925_p0 }
  0x2f   :  { %869 = vmatprep.mubr.msk.f32.mxu0 %vm248_vm1, %v45_v45 }
  0x30   :  { %220 = vperm.xlu0 %918, %v82_v46   ;;  %225 = vperm.xlu1 %919, %v83_v47  }
  0x32   :  { %870 = vmatmul.mubr.msk.f32.gmra.mrb[22].mxu0 %vm248_vm1, %v46_v48 }
  0x33   :  { %872 = vmatprep.mubr.msk.f32.mxu0 %vm248_vm1, %v47_v49 }
  0x34   :  { %140 = vperm.xlu0 %918, %v66_v50   ;;  %145 = vperm.xlu1 %919, %v67_v51  }
  0x36   :  { %873 = vmatmul.mubr.msk.f32.gmra.mrb[24].mxu0 %vm248_vm1, %v48_v52 }
  0x37   :  { %875 = vmatprep.mubr.msk.f32.mxu0 %vm248_vm1, %v49_v53 }
  0x38   :  { %230 = vperm.xlu0 %918, %v84_v54   ;;  %235 = vperm.xlu1 %919, %v85_v55  }
  0x3a   :  { %876 = vmatmul.mubr.msk.f32.gmra.mrb[26].mxu0 %vm248_vm1, %v50_v56 }
  0x3b   :  { %878 = vmatprep.mubr.msk.f32.mxu0 %vm248_vm1, %v51_v57 }
  0x3c   :  { %150 = vperm.xlu0 %918, %v68_v58   ;;  %155 = vperm.xlu1 %919, %v69_v59  }
  0x3e   :  { %879 = vmatmul.mubr.msk.f32.gmra.mrb[28].mxu0 %vm248_vm1, %v52_v60 }
  0x3f   :  { %881 = vmatprep.mubr.msk.f32.mxu0 %vm248_vm1, %v53_v61 }
  0x40   :  { %240 = vperm.xlu0 %918, %v86_v62   ;;  %245 = vperm.xlu1 %919, %v87_v63  }
  0x42   :  { %882 = vmatmul.mubr.msk.f32.gmra.mrb[30].mxu0 %vm248_vm1, %v54_v0 }
  0x44   :  { %160 = vperm.xlu0 %918, %v70_v1   ;;  %165 = vperm.xlu1 %919, %v71_v2  }
  0x48   :  { %610 = vperm.xlu0 %918, %v607_v3  }
  0x87   :  { %v91_v6 = vpop.permute.xlu1 %90  ;;  %v1212_v7 = vpop.permute.xlu0 %170 }
  0x8b   :  { %v96_v11 = vpop.permute.xlu1 %95  ;;  %v1221_v12 = vpop.permute.xlu0 %175 }
  0x8f   :  { %v1223_v13 = vpop.permute.xlu1 %185  ;;  %v1225_v14 = vpop.permute.xlu0 %180 }
  0x93   :  { %v106_v15 = vpop.permute.xlu1 %105  ;;  %v101_v16 = vpop.permute.xlu0 %100 }
  0x97   :  { %v1227_v17 = vpop.permute.xlu1 %195  ;;  %v1229_v18 = vpop.permute.xlu0 %190 }
  0x9b   :  { %v116_v19 = vpop.permute.xlu1 %115  ;;  %v111_v20 = vpop.permute.xlu0 %110 }
  0x9f   :  { %v1231_v21 = vpop.permute.xlu1 %205  ;;  %v1233_v22 = vpop.permute.xlu0 %200 }
  0xa3   :  { %v126_v23 = vpop.permute.xlu1 %125  ;;  %v121_v24 = vpop.permute.xlu0 %120 }
  0xa7   :  { %v1235_v25 = vpop.permute.xlu1 %215  ;;  %v1237_v26 = vpop.permute.xlu0 %210 }
  0xab   :  { %v136_v27 = vpop.permute.xlu1 %135  ;;  %v131_v28 = vpop.permute.xlu0 %130 }
  0xaf   :  { %v1239_v29 = vpop.permute.xlu1 %225  ;;  %v1241_v30 = vpop.permute.xlu0 %220 }
  0xb3   :  { %v146_v36 = vpop.permute.xlu1 %145  ;;  %v141_v39 = vpop.permute.xlu0 %140 }
  0xb7   :  { %v1245_v49 = vpop.permute.xlu1 %235  ;;  %v1249_v52 = vpop.permute.xlu0 %230 }
  0xbb   :  { %v156_v61 = vpop.permute.xlu1 %155  ;;  %v151_v0 = vpop.permute.xlu0 %150 }
  0xd9   :  { %v838_v31 = vpop.f32.mrb[0].mxu0 }
  0xda   :  { %v421_v32 = vadd.f32 %v838_v31, %v96_v11  ;;  %v415_v33 = vpop.f32.mrb[1].mxu0 }
  0xdb   :  { %v416_v34 = vadd.f32 %v415_v33, %v91_v6 }
  0xdc   :  { %v575_v35 = vmax.f32 %v421_v32, 0.0 }
  0xdd   :  { %v574_v37 = vmax.f32 %v416_v34, 0.0  ;;  %v841_v38 = vpop.f32.mrb[2].mxu0 }
  0xde   :  { %v431_v40 = vadd.f32 %v841_v38, %v106_v15  ;;  %v425_v41 = vpop.f32.mrb[3].mxu0 }
  0xdf   :  { %v426_v42 = vadd.f32 %v425_v41, %v101_v16  ;;  %v1243_v43 = vpack.c.bf16 %v575_v35, %v574_v37  ;;  %v1255_v16 = vpop.permute.xlu1 %245 }
  0xe0   :  { %v577_v44 = vmax.f32 %v431_v40, 0.0 }
  0xe1   :  { %v576_v45 = vmax.f32 %v426_v42, 0.0  ;;  %v844_v46 = vpop.f32.mrb[4].mxu0 }
  0xe2   :  { %v441_v47 = vadd.f32 %v844_v46, %v116_v19  ;;  %v435_v48 = vpop.f32.mrb[5].mxu0 }
  0xe3   :  { %v1247_v50 = vpack.c.bf16 %v577_v44, %v576_v45  ;;  %v436_v51 = vadd.f32 %v435_v48, %v111_v20  ;;  %v166_v37 = vpop.permute.xlu1 %165 }
  0xe4   :  { %v579_v53 = vmax.f32 %v441_v47, 0.0 }
  0xe5   :  { %v578_v54 = vmax.f32 %v436_v51, 0.0  ;;  %v847_v55 = vpop.f32.mrb[6].mxu0 }
  0xe6   :  { %v451_v56 = vadd.f32 %v847_v55, %v126_v23  ;;  %v445_v57 = vpop.f32.mrb[7].mxu0  ;;  %v1259_v23 = vpop.permute.xlu0 %240 }
  0xe7   :  { %v1251_v58 = vpack.c.bf16 %v579_v53, %v578_v54  ;;  %v446_v59 = vadd.f32 %v445_v57, %v121_v24 }
  0xe8   :  { %v581_v60 = vmax.f32 %v451_v56, 0.0 }
  0xe9   :  { %v580_v62 = vmax.f32 %v446_v59, 0.0  ;;  %v850_v63 = vpop.f32.mrb[8].mxu0 }
  0xea   :  { %v461_v1 = vadd.f32 %v850_v63, %v136_v27  ;;  %v455_v2 = vpop.f32.mrb[9].mxu0  ;;  %v161_v40 = vpop.permute.xlu0 %160 }
  0xeb   :  { %v1253_v3 = vpack.c.bf16 %v581_v60, %v580_v62  ;;  %v456_v4 = vadd.f32 %v455_v2, %v131_v28 }
  0xec   :  { %v583_v6 = vmax.f32 %v461_v1, 0.0 }
  0xed   :  { %v582_v8 = vmax.f32 %v456_v4, 0.0  ;;  %v853_v10 = vpop.f32.mrb[10].mxu0 }
  0xee   :  { %v471_v11 = vadd.f32 %v853_v10, %v146_v36  ;;  %v465_v15 = vpop.f32.mrb[11].mxu0 }
  0xef   :  { %v1257_v19 = vpack.c.bf16 %v583_v6, %v582_v8  ;;  %v466_v20 = vadd.f32 %v465_v15, %v141_v39 }
  0xf0   :  { %v585_v24 = vmax.f32 %v471_v11, 0.0 }
  0xf1   :  { %v584_v31 = vmax.f32 %v466_v20, 0.0  ;;  %v856_v32 = vpop.f32.mrb[12].mxu0 }
  0xf2   :  { %v481_v27 = vadd.f32 %v856_v32, %v156_v61  ;;  %v475_v33 = vpop.f32.mrb[13].mxu0 }
  0xf3   :  { %v1261_v34 = vpack.c.bf16 %v585_v24, %v584_v31  ;;  %v476_v28 = vadd.f32 %v475_v33, %v151_v0 }
  0xf4   :  { %v587_v35 = vmax.f32 %v481_v27, 0.0 }
  0xf5   :  { %v586_v38 = vmax.f32 %v476_v28, 0.0  ;;  %v859_v36 = vpop.f32.mrb[14].mxu0 }
  0xf6   :  { %v491_v41 = vadd.f32 %v859_v36, %v166_v37  ;;  %v485_v42 = vpop.f32.mrb[15].mxu0 }
  0xf7   :  { %v1263_v44 = vpack.c.bf16 %v587_v35, %v586_v38  ;;  %v486_v39 = vadd.f32 %v485_v42, %v161_v40 }
  0xf8   :  { %v589_v45 = vmax.f32 %v491_v41, 0.0 }
  0xf9   :  { %v588_v46 = vmax.f32 %v486_v39, 0.0  ;;  %v862_v47 = vpop.f32.mrb[16].mxu0 }
  0xfa   :  { %v501_v48 = vadd.f32 %v862_v47, %v1221_v12  ;;  %v495_v51 = vpop.f32.mrb[17].mxu0 }
  0xfb   :  { %v1266_v53 = vpack.c.bf16 %v589_v45, %v588_v46  ;;  %v496_v54 = vadd.f32 %v495_v51, %v1212_v7 }
  0xfc   :  { %v591_v55 = vmax.f32 %v501_v48, 0.0 }
  0xfd   :  { %v590_v56 = vmax.f32 %v496_v54, 0.0  ;;  %v865_v57 = vpop.f32.mrb[18].mxu0 }
  0xfe   :  { %v511_v59 = vadd.f32 %v865_v57, %v1223_v13  ;;  %v505_v60 = vpop.f32.mrb[19].mxu0 }
  0xff   :  { %v506_v61 = vadd.f32 %v505_v60, %v1225_v14  ;;  %v884_v62 = vpack.c.bf16 %v591_v55, %v590_v56 }
 0x100   :  { %v593_v63 = vmax.f32 %v511_v59, 0.0 }
 0x101   :  { %v592_v0 = vmax.f32 %v506_v61, 0.0  ;;  %v868_v1 = vpop.f32.mrb[20].mxu0  ;;  %885 = vmatprep.subr.bf16.mxu1 %v884_v62 }
 0x102   :  { %v521_v12 = vadd.f32 %v868_v1, %v1227_v17  ;;  %v515_v2 = vpop.f32.mrb[21].mxu0  ;;  %887 = vmatpush3.bf16.msra.mxu1 %v1243_v43 }
 0x103   :  { %v888_v4 = vpack.c.bf16 %v593_v63, %v592_v0  ;;  %v516_v7 = vadd.f32 %v515_v2, %v1229_v18 }
 0x104   :  { %v595_v6 = vmax.f32 %v521_v12, 0.0 }
 0x105   :  { %v594_v8 = vmax.f32 %v516_v7, 0.0  ;;  %v871_v10 = vpop.f32.mrb[22].mxu0  ;;  %889 = vmatprep.subr.bf16.mxu1 %v888_v4 }
 0x106   :  { %v531_v13 = vadd.f32 %v871_v10, %v1231_v21  ;;  %v525_v14 = vpop.f32.mrb[23].mxu0  ;;  %891 = vmatpush3.bf16.msra.mxu1 %v1247_v50 }
 0x107   :  { %v892_v11 = vpack.c.bf16 %v595_v6, %v594_v8  ;;  %v526_v15 = vadd.f32 %v525_v14, %v1233_v22 }
 0x108   :  { %v597_v20 = vmax.f32 %v531_v13, 0.0 }
 0x109   :  { %v596_v17 = vmax.f32 %v526_v15, 0.0  ;;  %v874_v24 = vpop.f32.mrb[24].mxu0  ;;  %893 = vmatprep.subr.bf16.mxu1 %v892_v11 }
 0x10a   :  { %v541_v43 = vadd.f32 %v874_v24, %v1235_v25  ;;  %v535_v31 = vpop.f32.mrb[25].mxu0  ;;  %895 = vmatpush3.bf16.msra.mxu1 %v1251_v58 }
 0x10b   :  { %v896_v18 = vpack.c.bf16 %v597_v20, %v596_v17  ;;  %v536_v32 = vadd.f32 %v535_v31, %v1237_v26 }
 0x10c   :  { %v599_v27 = vmax.f32 %v541_v43, 0.0 }
 0x10d   :  { %v598_v21 = vmax.f32 %v536_v32, 0.0  ;;  %v877_v33 = vpop.f32.mrb[26].mxu0  ;;  %897 = vmatprep.subr.bf16.mxu1 %v896_v18 }
 0x10e   :  { %v551_v50 = vadd.f32 %v877_v33, %v1239_v29  ;;  %v545_v28 = vpop.f32.mrb[27].mxu0  ;;  %899 = vmatpush3.bf16.msra.mxu1 %v1253_v3 }
 0x10f   :  { %v900_v22 = vpack.c.bf16 %v599_v27, %v598_v21  ;;  %v546_v35 = vadd.f32 %v545_v28, %v1241_v30 }
 0x110   :  { %v601_v37 = vmax.f32 %v551_v50, 0.0 }
 0x111   :  { %v600_v25 = vmax.f32 %v546_v35, 0.0  ;;  %v880_v38 = vpop.f32.mrb[28].mxu0  ;;  %901 = vmatprep.subr.bf16.mxu1 %v900_v22 }
 0x112   :  { %v561_v58 = vadd.f32 %v880_v38, %v1245_v49  ;;  %v555_v36 = vpop.f32.mrb[29].mxu0  ;;  %903 = vmatpush3.bf16.msra.mxu1 %v1257_v19  ;;  %v615_v19 = vsub.s32 0, %v1210_v5 }
 0x113   :  { %v904_v26 = vpack.c.bf16 %v601_v37, %v600_v25  ;;  %v556_v40 = vadd.f32 %v555_v36, %v1249_v52 }
 0x114   :  { %v603_v41 = vmax.f32 %v561_v58, 0.0  ;;  %v621_v47 = vrot.slane %v1218_v9, %v615_v19 }
 0x115   :  { %v602_v29 = vmax.f32 %v556_v40, 0.0  ;;  %v883_v42 = vpop.f32.mrb[30].mxu0  ;;  %905 = vmatprep.subr.bf16.mxu1 %v904_v26 }
 0x116   :  { %v571_v3 = vadd.f32 %v883_v42, %v1255_v16  ;;  %v565_v39 = vpop.f32.mrb[31].mxu0  ;;  %907 = vmatpush3.bf16.msra.mxu1 %v1261_v34  ;;  %v611_v16 = vpop.permute.xlu0 %610 }
 0x117   :  { %v908_v30 = vpack.c.bf16 %v603_v41, %v602_v29  ;;  %v566_v45 = vadd.f32 %v565_v39, %v1259_v23  ;;  %v616_v51 = vrot.slane %v611_v16, %v615_v19 }
 0x118   :  { %v605_v46 = vmax.f32 %v571_v3, 0.0 }
 0x119   :  { %v604_v49 = vmax.f32 %v566_v45, 0.0  ;;  %909 = vmatprep.subr.bf16.mxu1 %v908_v30 }
 0x11a   :  { %911 = vmatpush3.bf16.msra.mxu1 %v1263_v44 }
 0x11b   :  { %v912_v52 = vpack.c.bf16 %v605_v46, %v604_v49 }
 0x11d   :  { %913 = vmatprep.subr.bf16.mxu1 %v912_v52 }
 0x11e   :  { %915 = vmatpush3.bf16.msra.mxu1 %v1266_v53 }
 0x121   :  { %693 = vmatmul.mubr.f32.vlgmr.msra.gmra.mrb[0].mxu1 %v621_v47 }
 0x1f4   :  { %v831_v48 = vpop.f32.mrb[0].mxu1 }
 0x1f5   :  { %v832_v34 = vpop.f32.mrb[1].mxu1 }
 0x1f6   :  { %v833_v54 = vadd.f32 %v832_v34, %v831_v48 }
 0x1f8   :  { %v695_v23 = vadd.f32 %v833_v54, %v616_v51 }
 0x1fa   :  { %v765_v55 = vmul.f32 -1.442695, %v695_v23 }
 0x1fc   :  { %920 = vpow2.f32 %v765_v55 }
 0x206   :  { %v921_v56 = vpop.eup %920 }
 0x207   :  { %v701_v57 = vadd.f32 1.0, %v921_v56 }
 0x209   :  { %922 = vrcp.f32 %v701_v57 }
 0x213   :  { %v923_v44 = vpop.eup %922 }
 0x214   :  { %v707_v59 = vsub.f32 1.0, %v923_v44  ;;  %v711_v9 = vrot.slane %v923_v44, %v615_v19 }
 0x216   :  { %v715_v53 = vrot.slane %v707_v59, %v615_v19 }
 0x218   :  { %v716_v60 = vsel %vm706_vm2, %v711_v9, %v715_v53 }
 0x219   :  { %717 = vst [vmem:[#allocation3] sm:$0x3] %v716_v60 }
 0x21a   :  { %935 = shalt.err (!%p932_p4)
}
 0x21b   :  { %s936_s19 = scalar_lea.hbm %s1311_s5, 32 }
 0x21c   :  { %p937_p5 = scmp.ne.s32.totalorder %s1311_s5, %s936_s19  ;;  %p940_p6 = scmp.lt.u32.totalorder %s936_s19, %s1311_s5 }
 0x21e   :  { %p942_p7 = pnand %p940_p6, %p937_p5 }
 0x220   :  { %945 = shalt.err (!%p942_p7)
}
 0x221   :  { %727 = dma.vmem_to_hbm [thread:$0]  %s725_s3, 32, %s1311_s5, [#allocation4]  }
 0x222   :  { %946 = dma.done.wait [#allocation4], 32  }
 0x223   :  { %947 = vsyncadd [#allocation4], 4294967264 }
 0x224   :  { %731 = vsyncpa [#allocation4], 1 }

</bundles_post_ra>
